<compile_context>
chip_gen: v7x
topology: tpu7x:2x2x1
jax: 0.10.0
libtpu: 0.0.40
codegen_flags: <defaults>
</compile_context>

<pallas_src>
import functools
import math

import jax
import jax.numpy as jnp
from jax.experimental import pallas as pl
from jax.experimental.pallas import tpu as pltpu


def _round_up(x, m):
    return ((x + m - 1) // m) * m


def _normsoftmax2_kernel(x_ref, t_ref, wt_ref, cw_ref, out_ref,
                         wn_ref, num_acc, den_acc,
                         *, inv_temperature, num_classes):
    step = pl.program_id(0)

    # ---- one-time init: per-class L2-normalize W (with 1/temperature folded
    # into the same scale) into a resident VMEM scratch; zero accumulators.
    @pl.when(step == 0)
    def _init():
        w = wt_ref[...].astype(jnp.float32)                    # (D, C_pad)
        sumsq = jnp.sum(w * w, axis=0, keepdims=True)          # (1, C_pad)
        # F.normalize eps: max(||w||, 1e-12)  ==  rsqrt(max(||w||^2, 1e-24))
        scale = inv_temperature * jax.lax.rsqrt(jnp.maximum(sumsq, 1e-24))
        wn_ref[...] = (w * scale).astype(wn_ref.dtype)         # (D, C_pad)
        num_acc[...] = jnp.zeros_like(num_acc)
        den_acc[...] = jnp.zeros_like(den_acc)

    # ---- logits for this row tile (already temperature-scaled via wn).
    x = x_ref[...].astype(wn_ref.dtype)                        # (tile_n, D)
    logits = jnp.dot(x, wn_ref[...],
                     preferred_element_type=jnp.float32)       # (tile_n, C_pad)

    tile_n, c_pad = logits.shape
    cls_ids = jax.lax.broadcasted_iota(jnp.int32, (tile_n, c_pad), 1)
    # Padded class columns must not influence the max / logsumexp.
    logits = jnp.where(cls_ids < num_classes, logits, jnp.float32(-1e30))

    # ---- numerically-stable logsumexp over the class (lane) axis.
    m = jnp.max(logits, axis=1, keepdims=True)                 # (tile_n, 1)
    lse = jnp.log(jnp.sum(jnp.exp(logits - m), axis=1, keepdims=True)) + m

    # ---- gather target logit + per-class weight (no full logp matrix).
    tgt = t_ref[...]                                            # (tile_n, 1) i32
    onehot = (cls_ids == tgt).astype(jnp.float32)               # (tile_n, C_pad)
    picked_logit = jnp.sum(onehot * logits, axis=1, keepdims=True)    # (tile_n,1)
    picked_cw = jnp.sum(onehot * cw_ref[...], axis=1, keepdims=True)  # (tile_n,1)
    picked_logp = picked_logit - lse                            # (tile_n, 1)

    # Rows whose target lies outside [0, num_classes) — i.e. padding rows —
    # have an all-zero one-hot and contribute 0 to both numerator/denominator.
    num_acc[...] += jnp.sum(picked_cw * (-picked_logp), keepdims=True)
    den_acc[...] += jnp.sum(picked_cw, keepdims=True)

    # ---- finalize: weighted mean (CrossEntropyLoss(weight=cw, 'mean')).
    @pl.when(step == pl.num_programs(0) - 1)
    def _finalize():
        out_ref[...] = num_acc[...] / den_acc[...]


def norm_softmax_loss2(embeddings, instance_targets, weight, cw,
                       temperature=0.05, *, tile_n=512,
                       matmul_dtype=jnp.float32):
    """embeddings: (B, T, D) float; instance_targets: (B, T) int;
    weight: (C, D); cw: (C,). Returns scalar f32 loss.
    matmul_dtype=jnp.bfloat16 is recommended on v6e/v7x for large problems."""
    B, T, D = embeddings.shape
    C = weight.shape[0]
    N = B * T

    # Row tile: multiple of 8 sublanes, no larger than needed for small N.
    tile_n = max(8, min(int(tile_n), _round_up(N, 8)))
    tile_n = _round_up(tile_n, 8)
    n_pad = _round_up(N, tile_n)
    c_pad = _round_up(C, 128)                       # lane-dense class axis

    x = embeddings.reshape(N, D).astype(jnp.float32)
    t = instance_targets.reshape(N, 1).astype(jnp.int32)
    if n_pad != N:
        x = jnp.pad(x, ((0, n_pad - N), (0, 0)))
        t = jnp.pad(t, ((0, n_pad - N), (0, 0)), constant_values=-1)  # ignored
    # Weight is passed transposed (D, C_pad) so the kernel never transposes.
    w_t = weight.astype(jnp.float32).T              # (D, C)
    cw2 = cw.reshape(1, C).astype(jnp.float32)
    if c_pad != C:
        w_t = jnp.pad(w_t, ((0, 0), (0, c_pad - C)))
        cw2 = jnp.pad(cw2, ((0, 0), (0, c_pad - C)))

    grid = (n_pad // tile_n,)

    kernel = functools.partial(
        _normsoftmax2_kernel,
        inv_temperature=float(1.0 / temperature),
        num_classes=C)

    # VMEM budget: double-buffered x/t blocks + resident W/cw + normalized-W
    # scratch + (tile_n, c_pad) temporaries; capped at 64 MiB (v7x physical).
    cbytes = jnp.dtype(matmul_dtype).itemsize
    vmem_bytes = (2 * tile_n * D * 4 + 2 * tile_n * 4
                  + D * c_pad * 4 + c_pad * 4
                  + D * c_pad * cbytes
                  + 4 * tile_n * c_pad * 4
                  + (2 << 20))
    vmem_limit = int(min(64 * 1024 * 1024, max(vmem_bytes, 4 * 1024 * 1024)))

    out = pl.pallas_call(
        kernel,
        out_shape=jax.ShapeDtypeStruct((1, 1), jnp.float32),
        grid_spec=pltpu.PrefetchScalarGridSpec(
            num_scalar_prefetch=0,
            grid=grid,
            in_specs=[
                pl.BlockSpec((tile_n, D), lambda i: (i, 0)),   # x rows: streamed
                pl.BlockSpec((tile_n, 1), lambda i: (i, 0)),   # targets: streamed
                pl.BlockSpec((D, c_pad), lambda i: (0, 0)),    # W^T: VMEM-resident
                pl.BlockSpec((1, c_pad), lambda i: (0, 0)),    # cw: VMEM-resident
            ],
            out_specs=pl.BlockSpec((1, 1), lambda i: (0, 0)),
            scratch_shapes=[
                pltpu.VMEM((D, c_pad), matmul_dtype),  # normalized, 1/T-scaled W
                pltpu.VMEM((1, 1), jnp.float32),       # num accumulator
                pltpu.VMEM((1, 1), jnp.float32),       # den accumulator
            ]),
        compiler_params=pltpu.CompilerParams(
            dimension_semantics=("arbitrary",),
            vmem_limit_bytes=vmem_limit),
    )(x, t, w_t, cw2)
    return out[0, 0]


def _reference_loss(embeddings, instance_targets, weight, cw, temperature=0.05):
    """Pure-JAX reference mirroring the PyTorch forward."""
    wn = weight / jnp.maximum(
        jnp.linalg.norm(weight, axis=1, keepdims=True), 1e-12)
    logits = jnp.einsum("btd,cd->btc", embeddings, wn) / temperature  # (B,T,C)
    logp = jax.nn.log_softmax(logits, axis=-1)
    picked = jnp.take_along_axis(logp, instance_targets[..., None], axis=-1)[..., 0]
    w_t = cw[instance_targets]
    return -jnp.sum(w_t * picked) / jnp.sum(w_t)


if __name__ == "__main__":
    # Small shapes consistent with the module: dim=32, num_instances=16,
    # embeddings (B=2, T=8, dim), targets (B, T).
    B, T, D, C = 2, 8, 32, 16
    key = jax.random.PRNGKey(0)
    k_emb, k_w, k_cw, k_t = jax.random.split(key, 4)

    embeddings = jax.random.normal(k_emb, (B, T, D), dtype=jnp.float32)

    # Parameter init as in __init__: uniform(-stdv, stdv), stdv = 1/sqrt(dim).
    stdv = 1.0 / math.sqrt(D)
    weight = jax.random.uniform(k_w, (C, D), minval=-stdv, maxval=stdv,
                                dtype=jnp.float32)
    # Per-class CE weights (cw), deterministic positive values.
    cw = jax.random.uniform(k_cw, (C,), minval=0.5, maxval=1.5, dtype=jnp.float32)
    instance_targets = jax.random.randint(k_t, (B, T), 0, C, dtype=jnp.int32)

    loss = norm_softmax_loss2(embeddings, instance_targets, weight, cw,
                              temperature=0.05)
    loss = jax.block_until_ready(loss)

    ref = _reference_loss(embeddings, instance_targets, weight, cw,
                          temperature=0.05)
    assert jnp.allclose(loss, ref, rtol=1e-4, atol=1e-5), (loss, ref)

    print("KERNEL_OK")
</pallas_src>

<mosaic_0001>
module attributes {stable_mosaic.version = 11 : i64} {
  func.func @_normsoftmax2_kernel(%arg0: i32, %arg1: memref<16x32xf32, #tpu.memory_space<vmem>>, %arg2: memref<16x1xi32, #tpu.memory_space<vmem>>, %arg3: memref<32x128xf32, #tpu.memory_space<vmem>>, %arg4: memref<1x128xf32, #tpu.memory_space<vmem>>, %arg5: memref<1x1xf32, #tpu.memory_space<vmem>>, %arg6: memref<32x128xf32, #tpu.memory_space<vmem>>, %arg7: memref<1x1xf32, #tpu.memory_space<vmem>>, %arg8: memref<1x1xf32, #tpu.memory_space<vmem>>) attributes {dimension_semantics = [#tpu.dimension_semantics<arbitrary>], iteration_bounds = array<i64: 1>, scalar_prefetch = 0 : i64, scratch_operands = 3 : i64, tpu.core_type = #tpu.core_type<tc>, window_params = [{transform_indices = @transform_0, window_bounds = array<i64: 16, 32>}, {transform_indices = @transform_1, window_bounds = array<i64: 16, 1>}, {pipeline_mode = #tpu.pipeline_mode<synchronous>, transform_indices = @transform_2, window_bounds = array<i64: 32, 128>}, {pipeline_mode = #tpu.pipeline_mode<synchronous>, transform_indices = @transform_3, window_bounds = array<i64: 1, 128>}, {pipeline_mode = #tpu.pipeline_mode<synchronous>, transform_indices = @transform_4, window_bounds = array<i64: 1, 1>}]} {
    %c0_i32 = arith.constant 0 : i32
    %0 = arith.cmpi eq, %arg0, %c0_i32 : i32
    %1 = arith.extui %0 : i1 to i32
    %c0_i32_0 = arith.constant 0 : i32
    %2 = arith.cmpi ne, %1, %c0_i32_0 : i32
    scf.if %2 {
      %c0_26 = arith.constant 0 : index
      %c0_27 = arith.constant 0 : index
      %56 = vector.load %arg3[%c0_26, %c0_27] : memref<32x128xf32, #tpu.memory_space<vmem>>, vector<32x128xf32>
      %57 = arith.mulf %56, %56 : vector<32x128xf32>
      %cst_28 = arith.constant dense<0.000000e+00> : vector<128xf32>
      %58 = vector.multi_reduction <add>, %57, %cst_28 [0] : vector<32x128xf32> to vector<128xf32>
      %59 = vector.shape_cast %58 : vector<128xf32> to vector<1x128xf32>
      %cst_29 = arith.constant 1.000000e-24 : f32
      %60 = vector.broadcast %cst_29 : f32 to vector<1x128xf32>
      %61 = arith.maximumf %59, %60 : vector<1x128xf32>
      %62 = math.rsqrt %61 : vector<1x128xf32>
      %cst_30 = arith.constant 2.000000e+01 : f32
      %63 = vector.broadcast %cst_30 : f32 to vector<1x128xf32>
      %64 = arith.mulf %63, %62 : vector<1x128xf32>
      %65 = vector.broadcast %64 : vector<1x128xf32> to vector<32x128xf32>
      %66 = arith.mulf %56, %65 : vector<32x128xf32>
      %c0_31 = arith.constant 0 : index
      %c0_32 = arith.constant 0 : index
      %67 = vector.load %arg6[%c0_31, %c0_32] : memref<32x128xf32, #tpu.memory_space<vmem>>, vector<32x128xf32>
      tpu.vector_store %arg6[%c0_31, %c0_32], %66 {strides = array<i32>} : memref<32x128xf32, #tpu.memory_space<vmem>>, vector<32x128xf32>,
      %cst_33 = arith.constant 0.000000e+00 : f32
      %68 = vector.broadcast %cst_33 : f32 to vector<1x1xf32>
      %c0_34 = arith.constant 0 : index
      %c0_35 = arith.constant 0 : index
      %69 = vector.load %arg7[%c0_34, %c0_35] : memref<1x1xf32, #tpu.memory_space<vmem>>, vector<1x1xf32>
      tpu.vector_store %arg7[%c0_34, %c0_35], %68 {strides = array<i32>} : memref<1x1xf32, #tpu.memory_space<vmem>>, vector<1x1xf32>,
      %cst_36 = arith.constant 0.000000e+00 : f32
      %70 = vector.broadcast %cst_36 : f32 to vector<1x1xf32>
      %c0_37 = arith.constant 0 : index
      %c0_38 = arith.constant 0 : index
      %71 = vector.load %arg8[%c0_37, %c0_38] : memref<1x1xf32, #tpu.memory_space<vmem>>, vector<1x1xf32>
      tpu.vector_store %arg8[%c0_37, %c0_38], %70 {strides = array<i32>} : memref<1x1xf32, #tpu.memory_space<vmem>>, vector<1x1xf32>,
    } else {
    }
    %c0 = arith.constant 0 : index
    %c0_1 = arith.constant 0 : index
    %3 = vector.load %arg1[%c0, %c0_1] : memref<16x32xf32, #tpu.memory_space<vmem>>, vector<16x32xf32>
    %c0_2 = arith.constant 0 : index
    %c0_3 = arith.constant 0 : index
    %4 = vector.load %arg6[%c0_2, %c0_3] : memref<32x128xf32, #tpu.memory_space<vmem>>, vector<32x128xf32>
    %cst = arith.constant dense<0.000000e+00> : vector<16x128xf32>
    %5 = tpu.matmul %3, %4, %cst {dimension_numbers = #tpu.dot_dimension_numbers<[1], [0], [0], [1], [0, 0, 1, 1], [], []>} : vector<16x32xf32>, vector<32x128xf32>, vector<16x128xf32> -> vector<16x128xf32>
    %6 = tpu.iota {dimensions = array<i32: 1>} : vector<16x128xi32>
    %c16_i32 = arith.constant 16 : i32
    %7 = vector.broadcast %c16_i32 : i32 to vector<16x128xi32>
    %8 = arith.cmpi slt, %6, %7 : vector<16x128xi32>
    %cst_4 = arith.constant -1.000000e+30 : f32
    %9 = vector.broadcast %cst_4 : f32 to vector<16x128xf32>
    %10 = arith.select %8, %5, %9 : vector<16x128xi1>, vector<16x128xf32>
    %cst_5 = arith.constant dense<0xFF800000> : vector<16xf32>
    %11 = vector.multi_reduction <maximumf>, %10, %cst_5 [1] : vector<16x128xf32> to vector<16xf32>
    %12 = vector.shape_cast %11 : vector<16xf32> to vector<16x1xf32>
    %13 = vector.broadcast %12 : vector<16x1xf32> to vector<16x128xf32>
    %14 = arith.subf %10, %13 : vector<16x128xf32>
    %15 = math.exp %14 : vector<16x128xf32>
    %cst_6 = arith.constant dense<0.000000e+00> : vector<16xf32>
    %16 = vector.multi_reduction <add>, %15, %cst_6 [1] : vector<16x128xf32> to vector<16xf32>
    %17 = vector.shape_cast %16 : vector<16xf32> to vector<16x1xf32>
    %18 = math.log %17 : vector<16x1xf32>
    %19 = arith.addf %18, %12 : vector<16x1xf32>
    %c0_7 = arith.constant 0 : index
    %c0_8 = arith.constant 0 : index
    %20 = vector.load %arg2[%c0_7, %c0_8] : memref<16x1xi32, #tpu.memory_space<vmem>>, vector<16x1xi32>
    %21 = vector.broadcast %20 : vector<16x1xi32> to vector<16x128xi32>
    %22 = arith.cmpi eq, %6, %21 : vector<16x128xi32>
    %23 = arith.extui %22 : vector<16x128xi1> to vector<16x128xi32>
    %24 = arith.sitofp %23 : vector<16x128xi32> to vector<16x128xf32>
    %25 = arith.mulf %24, %10 : vector<16x128xf32>
    %cst_9 = arith.constant dense<0.000000e+00> : vector<16xf32>
    %26 = vector.multi_reduction <add>, %25, %cst_9 [1] : vector<16x128xf32> to vector<16xf32>
    %27 = vector.shape_cast %26 : vector<16xf32> to vector<16x1xf32>
    %c0_10 = arith.constant 0 : index
    %c0_11 = arith.constant 0 : index
    %28 = vector.load %arg4[%c0_10, %c0_11] : memref<1x128xf32, #tpu.memory_space<vmem>>, vector<1x128xf32>
    %29 = vector.broadcast %28 : vector<1x128xf32> to vector<16x128xf32>
    %30 = arith.mulf %24, %29 : vector<16x128xf32>
    %cst_12 = arith.constant dense<0.000000e+00> : vector<16xf32>
    %31 = vector.multi_reduction <add>, %30, %cst_12 [1] : vector<16x128xf32> to vector<16xf32>
    %32 = vector.shape_cast %31 : vector<16xf32> to vector<16x1xf32>
    %33 = arith.subf %27, %19 : vector<16x1xf32>
    %c0_13 = arith.constant 0 : index
    %c0_14 = arith.constant 0 : index
    %34 = vector.load %arg7[%c0_13, %c0_14] : memref<1x1xf32, #tpu.memory_space<vmem>>, vector<1x1xf32>
    %cst_15 = arith.constant 0.000000e+00 : f32
    %35 = vector.broadcast %cst_15 : f32 to vector<16x1xf32>
    %36 = arith.subf %35, %33 : vector<16x1xf32>
    %37 = arith.mulf %32, %36 : vector<16x1xf32>
    %38 = vector.shape_cast %37 : vector<16x1xf32> to vector<1x16x1xf32>
    %cst_16 = arith.constant dense<0.000000e+00> : vector<1xf32>
    %39 = vector.multi_reduction <add>, %38, %cst_16 [1, 2] : vector<1x16x1xf32> to vector<1xf32>
    %40 = vector.shape_cast %39 : vector<1xf32> to vector<1x1x1xf32>
    %41 = vector.extract %40[0, 0, 0] : f32 from vector<1x1x1xf32>
    %42 = vector.broadcast %41 : f32 to vector<1x1xf32>
    %43 = arith.addf %34, %42 : vector<1x1xf32>
    %c0_17 = arith.constant 0 : index
    %c0_18 = arith.constant 0 : index
    %44 = vector.load %arg7[%c0_17, %c0_18] : memref<1x1xf32, #tpu.memory_space<vmem>>, vector<1x1xf32>
    tpu.vector_store %arg7[%c0_17, %c0_18], %43 {strides = array<i32>} : memref<1x1xf32, #tpu.memory_space<vmem>>, vector<1x1xf32>,
    %c0_19 = arith.constant 0 : index
    %c0_20 = arith.constant 0 : index
    %45 = vector.load %arg8[%c0_19, %c0_20] : memref<1x1xf32, #tpu.memory_space<vmem>>, vector<1x1xf32>
    %46 = vector.shape_cast %32 : vector<16x1xf32> to vector<1x16x1xf32>
    %cst_21 = arith.constant dense<0.000000e+00> : vector<1xf32>
    %47 = vector.multi_reduction <add>, %46, %cst_21 [1, 2] : vector<1x16x1xf32> to vector<1xf32>
    %48 = vector.shape_cast %47 : vector<1xf32> to vector<1x1x1xf32>
    %49 = vector.extract %48[0, 0, 0] : f32 from vector<1x1x1xf32>
    %50 = vector.broadcast %49 : f32 to vector<1x1xf32>
    %51 = arith.addf %45, %50 : vector<1x1xf32>
    %c0_22 = arith.constant 0 : index
    %c0_23 = arith.constant 0 : index
    %52 = vector.load %arg8[%c0_22, %c0_23] : memref<1x1xf32, #tpu.memory_space<vmem>>, vector<1x1xf32>
    tpu.vector_store %arg8[%c0_22, %c0_23], %51 {strides = array<i32>} : memref<1x1xf32, #tpu.memory_space<vmem>>, vector<1x1xf32>,
    %c0_i32_24 = arith.constant 0 : i32
    %53 = arith.cmpi eq, %arg0, %c0_i32_24 : i32
    %54 = arith.extui %53 : i1 to i32
    %c0_i32_25 = arith.constant 0 : i32
    %55 = arith.cmpi ne, %54, %c0_i32_25 : i32
    scf.if %55 {
      %c0_26 = arith.constant 0 : index
      %c0_27 = arith.constant 0 : index
      %56 = vector.load %arg7[%c0_26, %c0_27] : memref<1x1xf32, #tpu.memory_space<vmem>>, vector<1x1xf32>
      %c0_28 = arith.constant 0 : index
      %c0_29 = arith.constant 0 : index
      %57 = vector.load %arg8[%c0_28, %c0_29] : memref<1x1xf32, #tpu.memory_space<vmem>>, vector<1x1xf32>
      %58 = arith.divf %56, %57 : vector<1x1xf32>
      %c0_30 = arith.constant 0 : index
      %c0_31 = arith.constant 0 : index
      %59 = vector.load %arg5[%c0_30, %c0_31] : memref<1x1xf32, #tpu.memory_space<vmem>>, vector<1x1xf32>
      tpu.vector_store %arg5[%c0_30, %c0_31], %58 {strides = array<i32>} : memref<1x1xf32, #tpu.memory_space<vmem>>, vector<1x1xf32>,
    } else {
    }
    return
  }
  func.func @transform_0(%arg0: i32) -> (i32, i32) {
    %c0_i32 = arith.constant 0 : i32
    %c0_i32_0 = arith.constant 0 : i32
    return %arg0, %c0_i32 : i32, i32
  }
  func.func @transform_1(%arg0: i32) -> (i32, i32) {
    %c0_i32 = arith.constant 0 : i32
    %c0_i32_0 = arith.constant 0 : i32
    return %arg0, %c0_i32 : i32, i32
  }
  func.func @transform_2(%arg0: i32) -> (i32, i32) {
    %c0_i32 = arith.constant 0 : i32
    %c0_i32_0 = arith.constant 0 : i32
    %c0_i32_1 = arith.constant 0 : i32
    return %c0_i32, %c0_i32_0 : i32, i32
  }
  func.func @transform_3(%arg0: i32) -> (i32, i32) {
    %c0_i32 = arith.constant 0 : i32
    %c0_i32_0 = arith.constant 0 : i32
    %c0_i32_1 = arith.constant 0 : i32
    return %c0_i32, %c0_i32_0 : i32, i32
  }
  func.func @transform_4(%arg0: i32) -> (i32, i32) {
    %c0_i32 = arith.constant 0 : i32
    %c0_i32_0 = arith.constant 0 : i32
    %c0_i32_1 = arith.constant 0 : i32
    return %c0_i32, %c0_i32_0 : i32, i32
  }
}

</mosaic_0001>

<bundles_post_ra>
// kernel: tpu_custom_call.1
= control target key start
LH: loop header
LB: loop body
LE: loop exit
PB: predicated region body
PF: predicated region fallthrough
CT: control target
= control target key end

     0   :  { %9 = vsyncpa [#allocation6], 0  ;;  %s455_s0 = inlined_call_operand.vmem [shape: f32[16,32], index: 0, kind: input, shape index: {}]   ;;  %s456_s1 = inlined_call_operand.vmem [shape: s32[16,1], index: 1, kind: input, shape index: {}]   ;;  %s457_s2 = inlined_call_operand.hbm [shape: f32[32,128], index: 2, kind: input, shape index: {}]   ;;  %s458_s3 = inlined_call_operand.vmem [shape: f32[1,128], index: 3, kind: input, shape index: {}]   ;;  %s459_s4 = inlined_call_operand.hbm [shape: f32[1,1], index: 4, kind: output, shape index: {}]  }
   0x1   :  { %10 = vsyncpa [#allocation7], 0  ;;  %s378_s15 = smov [#allocation5]   ;;  %s330_s19 = scalar_lea.hbm %s457_s2, 512 }
   0x2   :  { %s20_s16 = sshll.u32 %s378_s15, 4  ;;  %p331_p0 = scmp.ne.s32.totalorder %s457_s2, %s330_s19  ;;  %s21_s16 = int_to_ptr.vmem [resolvable:$true] %s20_s16 }
   0x3   :  { %p334_p1 = scmp.lt.u32.totalorder %s330_s19, %s457_s2 }
   0x5   :  { %p336_p2 = pnand %p334_p1, %p331_p0 }
   0x7   :  { %339 = shalt.err (!%p336_p2)
}
   0x8   :  { %s340_s24 = scalar_lea.vmem %s21_s16, 512  ;;  %p345_p4 = scmp.lt.s32.totalorder %s21_s16, %s21_s16 }
   0x9   :  { %p341_p3 = scmp.ne.s32.totalorder %s21_s16, %s340_s24  ;;  %p346_p5 = scmp.lt.s32.totalorder %s340_s24, %s340_s24 }
   0xb   :  { %p347_p6 = por %p346_p5, %p345_p4 }
   0xd   :  { %p348_p7 = pnand %p347_p6, %p341_p3 }
   0xf   :  { %351 = shalt.err (!%p348_p7)
}
  0x10   :  { %s379_s25 = smov 128   ;;  %s380_s26 = smov 8  }
  0x11   :  { %26 = dma.hbm_to_vmem [thread:$0]  %s457_s2, 512, %s21_s16, [#allocation6], %s379_s25, %s379_s25, %s380_s26  }
  0x12   :  { %374 = dma.done.wait [#allocation6], 512  }
  0x13   :  { %375 = vsyncadd [#allocation6], 4294966784  ;;  %v381_v0 = vmov 0   ;;  %vm73_vm0 = vcmask 261120   ;;  %v36_v1 = vld [vmem:[#allocation5] sm:$0xff]  ;;  %v37_v2 = vld [vmem:[#allocation5 + $0x8] sm:$0xff]  ;;  %v155_v31 = vlaneseq }
  0x14   :  { %316 = vset.pattern.permute.xlu1 %v381_v0  ;;  %317 = vset.pattern.permute.xlu0 %v381_v0  ;;  %v38_v3 = vld [vmem:[#allocation5 + $0x10] sm:$0xff]  ;;  %v39_v4 = vld [vmem:[#allocation5 + $0x18] sm:$0xff]  ;;  %v40_v5 = vmul.f32 %v36_v1, %v36_v1  ;;  %v41_v6 = vmul.f32 %v37_v2, %v37_v2  ;;  %v181_v12 = vld [vmem:[%s456_s1 + $0x8] sm:$0xff]  ;;  %v382_v46 = vmov 0.0   ;;  %vm220_vm4 = vcmask 7168   ;;  %s383_s11 = smov [#allocation8]  }
  0x15   :  { %v42_v7 = vmul.f32 %v38_v3, %v38_v3  ;;  %v67_v8 = vld [vmem:[%s455_s0] sm:$0xff]  ;;  %v43_v10 = vmul.f32 %v39_v4, %v39_v4  ;;  %v68_v30 = vld [vmem:[%s455_s0 + $0x8] sm:$0xff]  ;;  %v156_v32 = vand.u32 127, %v155_v31  ;;  %vm64_vm5 = vcmask 0   ;;  %s267_s12 = sshll.u32 %s383_s11, 4  ;;  %s268_s12 = int_to_ptr.vmem [resolvable:$true] %s267_s12 }
  0x16   :  { %295 = vmatprep.mubr.msk.f32.mxu0 %vm73_vm0, %v67_v8  ;;  %v180_v9 = vld [vmem:[%s456_s1] sm:$0xff]  ;;  %v44_v11 = vadd.f32 %v41_v6, %v40_v5  ;;  %65 = vst.msk [vmem:[#allocation3] sm:$0x1] %vm64_vm5, %v382_v46  ;;  %66 = vst.msk [vmem:[#allocation4] sm:$0x1] %vm64_vm5, %v382_v46  ;;  %s352_s13 = scalar_lea.vmem %s268_s12, 16  ;;  %p357_p9 = scmp.lt.s32.totalorder %s268_s12, %s268_s12 }
  0x17   :  { %183 = vperm.xlu1 %316, %v180_v9   ;;  %vm157_vm1 = vcmp.lt.s32.totalorder %v156_v32, 16  ;;  %v280_v51 = vld [vmem:[%s458_s3] ss:$0 sm:$0xff]  ;;  %p353_p8 = scmp.ne.s32.totalorder %s268_s12, %s352_s13  ;;  %s356_s14 = scalar_lea.vmem %s268_s12, 32 }
  0x18   :  { %v45_v13 = vadd.f32 %v44_v11, %v42_v7  ;;  %p358_p10 = scmp.lt.s32.totalorder %s356_s14, %s352_s13 }
  0x1a   :  { %v46_v14 = vadd.f32 %v45_v13, %v43_v10  ;;  %p359_p11 = por %p358_p10, %p357_p9 }
  0x1b   :  { %186 = vperm.xlu1 %316, %v181_v12  }
  0x1c   :  { %v47_v15 = vrot.slane %v46_v14, 4  ;;  %p360_p12 = pnand %p359_p11, %p353_p8 }
  0x1e   :  { %v48_v16 = vadd.f32 %v47_v15, %v46_v14 }
  0x20   :  { %v49_v17 = vrot.slane %v48_v16, 2 }
  0x22   :  { %v50_v18 = vadd.f32 %v49_v17, %v48_v16 }
  0x24   :  { %v51_v19 = vrot.slane %v50_v18, 1 }
  0x26   :  { %v52_v20 = vadd.f32 %v51_v19, %v50_v18 }
  0x28   :  { %v53_v21 = vmax.f32 %v52_v20, 1e-24 }
  0x2a   :  { %318 = vrsqrt.f32 %v53_v21 }
  0x34   :  { %v319_v22 = vpop.eup %318 }
  0x35   :  { %v55_v23 = vmul.f32 20.0, %v319_v22 }
  0x37   :  { %v56_v24 = vmul.f32 %v55_v23, %v36_v1  ;;  %v57_v25 = vmul.f32 %v55_v23, %v37_v2  ;;  %v58_v26 = vmul.f32 %v55_v23, %v38_v3  ;;  %v59_v27 = vmul.f32 %v55_v23, %v39_v4 }
  0x39   :  { %v298_v28 = vpack.c.bf16 %v57_v25, %v56_v24  ;;  %v302_v29 = vpack.c.bf16 %v59_v27, %v58_v26 }
  0x3b   :  { %299 = vmatprep.subr.bf16.mxu0 %v298_v28 }
  0x3c   :  { %301 = vmatpush3.bf16.msra.mxu0 %v298_v28 }
  0x3d   :  { %303 = vmatprep.subr.bf16.mxu0 %v302_v29 }
  0x40   :  { %305 = vmatpush3.bf16.msra.mxu0 %v302_v29  ;;  %v215_v29 = vld [vmem:[#allocation3] sm:$0x1] }
  0x43   :  { %296 = vmatmul.mubr.msk.f32.vlgmr.msra.gmra.mrb[0].mxu0 %vm73_vm0, %v68_v30 }
  0x96   :  { %v184_v42 = vpop.permute.xlu1 %183 }
  0x97   :  { %vm188_vm2 = vcmp.eq.s32.totalorder %v156_v32, %v184_v42 }
  0x98   :  { %v278_v47 = vsel %vm188_vm2, 1.0, %v382_v46 }
  0x99   :  { %v207_v53 = vmul.f32 %v280_v51, %v278_v47 }
  0x9a   :  { %v187_v44 = vpop.permute.xlu1 %186 }
  0x9b   :  { %vm189_vm3 = vcmp.eq.s32.totalorder %v156_v32, %v187_v44  ;;  %v237_v32 = vld [vmem:[#allocation4] sm:$0x1] }
  0x9c   :  { %v279_v50 = vsel %vm189_vm3, 1.0, %v382_v46 }
  0x9d   :  { %v208_v54 = vmul.f32 %v280_v51, %v279_v50 }
 0x116   :  { %v297_v33 = vpop.f32.mrb[0].mxu0 }
 0x117   :  { %v146_v34 = vpop.f32.mrb[1].mxu0  ;;  %v159_v36 = vsel %vm157_vm1, %v297_v33, -1e+30 }
 0x118   :  { %v158_v35 = vsel %vm157_vm1, %v146_v34, -1e+30  ;;  %v195_v52 = vmul.f32 %v279_v50, %v159_v36 }
 0x119   :  { %160 = vmax.xlane.f32.xlu0 %v158_v35  ;;  %v194_v48 = vmul.f32 %v278_v47, %v158_v35 }
 0x11d   :  { %162 = vmax.xlane.f32.xlu0 %v159_v36 }
 0x1a6   :  { %v161_v37 = vpop.xlane.xlu0 %160 }
 0x1a7   :  { %v164_v38 = vsub.f32 %v158_v35, %v161_v37 }
 0x1a9   :  { %v166_v39 = vmul.f32 1.442695, %v164_v38 }
 0x1aa   :  { %v163_v40 = vpop.xlane.xlu0 %162 }
 0x1ab   :  { %320 = vpow2.f32 %v166_v39  ;;  %v165_v41 = vsub.f32 %v159_v36, %v163_v40 }
 0x1ad   :  { %v168_v43 = vmul.f32 1.442695, %v165_v41 }
 0x1af   :  { %322 = vpow2.f32 %v168_v43 }
 0x1b5   :  { %v321_v45 = vpop.eup %320 }
 0x1b6   :  { %170 = vadd.xlane.f32.xlu0 %v321_v45 }
 0x1b9   :  { %v323_v49 = vpop.eup %322 }
 0x1ba   :  { %172 = vadd.xlane.f32.xlu1 %v323_v49  ;;  %196 = vadd.xlane.f32.xlu0 %v194_v48 }
 0x1be   :  { %198 = vadd.xlane.f32.xlu0 %v195_v52 }
 0x1c2   :  { %209 = vadd.xlane.f32.xlu0 %v207_v53 }
 0x1c6   :  { %211 = vadd.xlane.f32.xlu0 %v208_v54 }
 0x243   :  { %v171_v55 = vpop.xlane.xlu0 %170 }
 0x244   :  { %324 = vlog2.f32 %v171_v55 }
 0x247   :  { %v173_v56 = vpop.xlane.xlu1 %172  ;;  %v197_v57 = vpop.xlane.xlu0 %196 }
 0x248   :  { %326 = vlog2.f32 %v173_v56 }
 0x24b   :  { %v199_v59 = vpop.xlane.xlu0 %198 }
 0x24e   :  { %v325_v58 = vpop.eup %324 }
 0x24f   :  { %v175_v60 = vmul.f32 0.6931472, %v325_v58  ;;  %v210_v1 = vpop.xlane.xlu0 %209 }
 0x250   :  { %v238_v13 = vsel %vm220_vm4, %v210_v1, 0.0 }
 0x251   :  { %v178_v61 = vadd.f32 %v175_v60, %v161_v37 }
 0x252   :  { %v327_v62 = vpop.eup %326 }
 0x253   :  { %v177_v63 = vmul.f32 0.6931472, %v327_v62  ;;  %v213_v0 = vsub.f32 %v197_v57, %v178_v61  ;;  %v212_v7 = vpop.xlane.xlu0 %211 }
 0x254   :  { %v239_v12 = vsel %vm220_vm4, %v212_v7, 0.0 }
 0x255   :  { %v216_v2 = vsub.f32 0.0, %v213_v0  ;;  %v179_v3 = vadd.f32 %v177_v63, %v163_v40  ;;  %v240_v14 = vadd.f32 %v239_v12, %v238_v13 }
 0x257   :  { %v214_v4 = vsub.f32 %v199_v59, %v179_v3  ;;  %v218_v6 = vmul.f32 %v216_v2, %v210_v1 }
 0x259   :  { %v217_v5 = vsub.f32 0.0, %v214_v4  ;;  %v221_v9 = vsel %vm220_vm4, %v218_v6, 0.0 }
 0x25b   :  { %v219_v8 = vmul.f32 %v217_v5, %v212_v7 }
 0x25d   :  { %v222_v10 = vsel %vm220_vm4, %v219_v8, 0.0 }
 0x25e   :  { %v223_v11 = vadd.f32 %v222_v10, %v221_v9 }
 0x260   :  { %224 = vadd.xlane.f32.xlu0 %v223_v11 }
 0x264   :  { %241 = vadd.xlane.f32.xlu0 %v240_v14 }
 0x2ed   :  { %v225_v15 = vpop.xlane.xlu0 %224 }
 0x2ee   :  { %v226_v16 = vrot.slane %v225_v15, 4 }
 0x2f0   :  { %v227_v17 = vadd.f32 %v226_v16, %v225_v15 }
 0x2f1   :  { %v242_v18 = vpop.xlane.xlu0 %241 }
 0x2f2   :  { %v228_v19 = vrot.slane %v227_v17, 2  ;;  %v243_v20 = vrot.slane %v242_v18, 4 }
 0x2f4   :  { %v244_v21 = vadd.f32 %v243_v20, %v242_v18  ;;  %v229_v22 = vadd.f32 %v228_v19, %v227_v17 }
 0x2f6   :  { %v245_v23 = vrot.slane %v244_v21, 2  ;;  %v230_v24 = vrot.slane %v229_v22, 1 }
 0x2f8   :  { %v246_v25 = vadd.f32 %v245_v23, %v244_v21  ;;  %v231_v26 = vadd.f32 %v230_v24, %v229_v22 }
 0x2fa   :  { %306 = vpush %v231_v26  ;;  %v247_v27 = vrot.slane %v246_v25, 1 }
 0x2fc   :  { %v248_v28 = vadd.f32 %v247_v27, %v246_v25 }
 0x2fe   :  { %308 = vpush %v248_v28 }
 0x32b   :  { %s307_s3 = spop %306 }
 0x32c   :  { %v233_v30 = vstv %s307_s3 }
 0x32d   :  { %v234_v31 = vadd.f32 %v233_v30, %v215_v29 }
 0x32f   :  { %236 = vst.msk [vmem:[#allocation3] sm:$0x1] %vm64_vm5, %v234_v31  ;;  %s309_s10 = spop %308 }
 0x330   :  { %v250_v33 = vstv %s309_s10 }
 0x331   :  { %v251_v34 = vadd.f32 %v250_v33, %v237_v32 }
 0x333   :  { %252 = vst.msk [vmem:[#allocation4] sm:$0x1] %vm64_vm5, %v251_v34 }
 0x336   :  { %v256_v37 = vld [vmem:[#allocation3] sm:$0x1] }
 0x33a   :  { %v257_v35 = vld [vmem:[#allocation4] sm:$0x1] }
 0x33b   :  { %328 = vrcp.f32 %v257_v35 }
 0x345   :  { %v329_v36 = vpop.eup %328 }
 0x346   :  { %v259_v38 = vmul.f32 %v329_v36, %v256_v37 }
 0x348   :  { %260 = vst.msk [vmem:[#allocation8] sm:$0x1] %vm64_vm5, %v259_v38 }
 0x349   :  { %363 = shalt.err (!%p360_p12)
}
 0x34a   :  { %s364_s17 = scalar_lea.hbm %s459_s4, 16 }
 0x34b   :  { %p365_p13 = scmp.ne.s32.totalorder %s459_s4, %s364_s17  ;;  %p368_p0 = scmp.lt.u32.totalorder %s364_s17, %s459_s4 }
 0x34d   :  { %p370_p1 = pnand %p368_p0, %p365_p13 }
 0x34f   :  { %373 = shalt.err (!%p370_p1)
}
 0x350   :  { %270 = dma.vmem_to_hbm [thread:$0]  %s268_s12, 16, %s459_s4, [#allocation7]  }
 0x351   :  { %376 = dma.done.wait [#allocation7], 16  }
 0x352   :  { %377 = vsyncadd [#allocation7], 4294967280 }
 0x353   :  { %274 = vsyncpa [#allocation6], 1 }
 0x354   :  { %275 = vsyncpa [#allocation7], 1 }

</bundles_post_ra>
